<compile_context>
chip_gen: v6e
topology: v6e:2x2x1
jax: 0.10.0
libtpu: 0.0.40
codegen_flags: <defaults>
</compile_context>

<pallas_src>
import jax
import jax.numpy as jnp
from jax.experimental import pallas as pl
from jax.experimental.pallas import tpu as pltpu


def _round_up(n, m):
    return ((n + m - 1) // m) * m


def _choose_tile_b(B, target=1024):
    """Pick a batch tile.

    - B <= 8: single full-dim tile (legal: block dim equals array dim).
    - Otherwise: multiple of 8, as large as possible (<= target) while
      guaranteeing at least 2 grid steps so a 2-TC chip (v7x) shards work.
      Per-step VMEM at these widths is ~1 MiB, far below any scoped limit.
    """
    if B <= 8:
        return B
    half = _round_up((B + 1) // 2, 8)
    return min(target, half)


def _make_encoder_kernel(n_linear, z_dim):
    """Fused MLP kernel: all linears + ReLUs + masked-exp epilogue."""

    def kernel(*refs):
        x_ref = refs[0]
        param_refs = refs[1:1 + 2 * n_linear]
        out_ref = refs[-1]

        h = x_ref[...]                                   # f32 (tile_b, x_dim)
        for li in range(n_linear):
            w = param_refs[2 * li][...]                  # bf16 (in, out_pad)
            b = param_refs[2 * li + 1][...]              # f32  (1, out_pad)
            acc = jnp.dot(h.astype(w.dtype), w,
                          preferred_element_type=jnp.float32)
            h = acc + b                                  # f32
            if li < n_linear - 1:                        # ReLU between linears only
                h = jnp.maximum(h, 0.0)

        # Single lane-dense output slab; exp() only on the std lanes
        # (>= z_dim), with the where-safe-exp guard so the unselected branch
        # never evaluates exp on the z_pred values.
        lane = jax.lax.broadcasted_iota(jnp.int32, h.shape, 1)
        std_mask = lane >= z_dim
        out = jnp.where(std_mask, jnp.exp(jnp.where(std_mask, h, 0.0)), h)
        out_ref[...] = out.astype(out_ref.dtype)

    return kernel


def prepare_encoder_params(params, x_dim, compute_dtype=jnp.bfloat16):
    """ONE-TIME prep: pad output dims to 128 lanes, cast weights to bf16.

    Call once at init; the result is reused for every forward pass.
    Padded rows/cols are zero, so valid lanes are bit-identical to the
    unpadded computation.
    """
    prepped = []
    in_dim = x_dim                      # first dot keeps K = x_dim (no pad)
    for (w, b) in params:
        in_size, out_size = w.shape
        assert in_size <= in_dim
        out_pad = _round_up(out_size, 128)
        w_p = jnp.zeros((in_dim, out_pad), compute_dtype)
        w_p = w_p.at[:in_size, :out_size].set(w.astype(compute_dtype))
        b_p = jnp.zeros((1, out_pad), jnp.float32)
        b_p = b_p.at[:, :out_size].set(b.reshape(1, -1).astype(jnp.float32))
        prepped.append((w_p, b_p))
        in_dim = out_pad
    return prepped


def encoder_forward(x, prepped_params, z_dim, *, tile_b=None):
    """Run the Encoder forward pass with a single fused Pallas kernel.

    x:              (B, x_dim) float32 (passed to the kernel unpadded/uncast)
    prepped_params: output of prepare_encoder_params (padded bf16 W, f32 b)
    returns (z_pred, z_std), each (B, z_dim) float32
    """
    B, x_dim = x.shape
    n_linear = len(prepped_params)
    out_pad_last = prepped_params[-1][0].shape[1]

    if tile_b is None:
        tile_b = _choose_tile_b(B)

    # Pad the batch up to a multiple of tile_b (cheap: only B rows x x_dim
    # cols) so the grid always has uniform, multiple-of-8 tiles.
    B_pad = _round_up(B, tile_b)
    x_in = x if B_pad == B else jnp.pad(x, ((0, B_pad - B), (0, 0)))
    grid = (B_pad // tile_b,)

    kernel = _make_encoder_kernel(n_linear, z_dim)

    # ---- block specs: tile over batch; params fully resident ----
    in_specs = [pl.BlockSpec((tile_b, x_dim), lambda i: (i, 0))]
    flat_params = []
    flops = 0
    param_bytes = 0
    for (w_p, b_p) in prepped_params:
        in_specs.append(pl.BlockSpec(w_p.shape, lambda i: (0, 0)))
        in_specs.append(pl.BlockSpec(b_p.shape, lambda i: (0, 0)))
        flat_params.extend([w_p, b_p])
        flops += 2 * B_pad * w_p.shape[0] * w_p.shape[1]
        param_bytes += (w_p.size * w_p.dtype.itemsize + b_p.size * 4)

    out_specs = pl.BlockSpec((tile_b, out_pad_last), lambda i: (i, 0))
    out_shape = jax.ShapeDtypeStruct((B_pad, out_pad_last), jnp.float32)

    cost = pl.CostEstimate(
        flops=flops,
        transcendentals=B_pad * out_pad_last,
        bytes_accessed=(x_in.size * x_in.dtype.itemsize
                        + param_bytes
                        + B_pad * out_pad_last * 4),
    )

    out = pl.pallas_call(
        kernel,
        grid=grid,
        in_specs=in_specs,
        out_specs=out_specs,
        out_shape=out_shape,
        compiler_params=pltpu.CompilerParams(
            dimension_semantics=("parallel",),
        ),
        cost_estimate=cost,
    )(x_in, *flat_params)

    # Slice the slab once (drops batch padding + dead lanes), then split.
    head = out[:B, :2 * z_dim]
    z_pred = head[:, :z_dim]
    z_std = head[:, z_dim:]
    return z_pred, z_std


def init_encoder_params(key, x_dim, z_dim, q_z_nn_layers, q_z_nn_width):
    """Deterministic init matching PyTorch nn.Linear default (U[-1/sqrt(in), 1/sqrt(in)])."""
    sizes = [x_dim] + q_z_nn_layers * [q_z_nn_width] + [z_dim * 2]
    params = []
    for in_size, out_size in zip(sizes[:-1], sizes[1:]):
        key, kw, kb = jax.random.split(key, 3)
        bound = 1.0 / jnp.sqrt(jnp.float32(in_size))
        w = jax.random.uniform(kw, (in_size, out_size), jnp.float32, -bound, bound)
        b = jax.random.uniform(kb, (1, out_size), jnp.float32, -bound, bound)
        params.append((w, b))
    return params


def encoder_forward_ref(x, params, z_dim, compute_dtype=jnp.bfloat16):
    """Pure-JAX reference mimicking the kernel numerics (bf16 MXU, f32 accum)."""
    h = x
    for li, (w, b) in enumerate(params):
        h = jnp.dot(h.astype(compute_dtype), w.astype(compute_dtype),
                    preferred_element_type=jnp.float32) + b
        if li < len(params) - 1:
            h = jnp.maximum(h, 0.0)
    return h[:, :z_dim], jnp.exp(h[:, z_dim:])


if __name__ == "__main__":
    # Small shapes consistent with the module.
    B = 8
    x_dim = 16
    z_dim = 4
    q_z_nn_layers = 2
    q_z_nn_width = 32

    key = jax.random.PRNGKey(0)
    key, kx = jax.random.split(key)
    x = jax.random.normal(kx, (B, x_dim), jnp.float32)

    params = init_encoder_params(key, x_dim, z_dim, q_z_nn_layers, q_z_nn_width)
    # One-time padding/cast (kept out of the per-call path).
    prepped = prepare_encoder_params(params, x_dim)

    z_pred, z_std = encoder_forward(x, prepped, z_dim)
    jax.block_until_ready((z_pred, z_std))

    # Verify against the matching-numerics pure-JAX reference.
    zp_ref, zs_ref = encoder_forward_ref(x, params, z_dim)
    assert z_pred.shape == (B, z_dim) and z_std.shape == (B, z_dim)
    assert jnp.allclose(z_pred, zp_ref, atol=1e-3, rtol=1e-3)
    assert jnp.allclose(z_std, zs_ref, atol=1e-3, rtol=1e-3)
    assert bool(jnp.all(z_std > 0))

    print("KERNEL_OK")
</pallas_src>

<mosaic_0001>
module attributes {stable_mosaic.version = 11 : i64} {
  func.func @kernel(%arg0: i32, %arg1: memref<8x16xf32, #tpu.memory_space<vmem>>, %arg2: memref<16x128xbf16, #tpu.memory_space<vmem>>, %arg3: memref<1x128xf32, #tpu.memory_space<vmem>>, %arg4: memref<128x128xbf16, #tpu.memory_space<vmem>>, %arg5: memref<1x128xf32, #tpu.memory_space<vmem>>, %arg6: memref<128x128xbf16, #tpu.memory_space<vmem>>, %arg7: memref<1x128xf32, #tpu.memory_space<vmem>>, %arg8: memref<8x128xf32, #tpu.memory_space<vmem>>) attributes {dimension_semantics = [#tpu.dimension_semantics<parallel>], iteration_bounds = array<i64: 1>, scalar_prefetch = 0 : i64, scratch_operands = 0 : i64, tpu.core_type = #tpu.core_type<tc>, window_params = [{transform_indices = @transform_0, window_bounds = array<i64: 8, 16>}, {pipeline_mode = #tpu.pipeline_mode<synchronous>, transform_indices = @transform_1, window_bounds = array<i64: 16, 128>}, {pipeline_mode = #tpu.pipeline_mode<synchronous>, transform_indices = @transform_2, window_bounds = array<i64: 1, 128>}, {pipeline_mode = #tpu.pipeline_mode<synchronous>, transform_indices = @transform_3, window_bounds = array<i64: 128, 128>}, {pipeline_mode = #tpu.pipeline_mode<synchronous>, transform_indices = @transform_4, window_bounds = array<i64: 1, 128>}, {pipeline_mode = #tpu.pipeline_mode<synchronous>, transform_indices = @transform_5, window_bounds = array<i64: 128, 128>}, {pipeline_mode = #tpu.pipeline_mode<synchronous>, transform_indices = @transform_6, window_bounds = array<i64: 1, 128>}, {transform_indices = @transform_7, window_bounds = array<i64: 8, 128>}]} {
    %c0 = arith.constant 0 : index
    %c0_0 = arith.constant 0 : index
    %0 = vector.load %arg1[%c0, %c0_0] : memref<8x16xf32, #tpu.memory_space<vmem>>, vector<8x16xf32>
    %c0_1 = arith.constant 0 : index
    %c0_2 = arith.constant 0 : index
    %1 = vector.load %arg2[%c0_1, %c0_2] : memref<16x128xbf16, #tpu.memory_space<vmem>>, vector<16x128xbf16>
    %c0_3 = arith.constant 0 : index
    %c0_4 = arith.constant 0 : index
    %2 = vector.load %arg3[%c0_3, %c0_4] : memref<1x128xf32, #tpu.memory_space<vmem>>, vector<1x128xf32>
    %3 = arith.truncf %0 : vector<8x16xf32> to vector<8x16xbf16>
    %cst = arith.constant dense<0.000000e+00> : vector<8x128xf32>
    %4 = tpu.matmul %3, %1, %cst {dimension_numbers = #tpu.dot_dimension_numbers<[1], [0], [0], [1], [0, 0, 1, 1], [], []>} : vector<8x16xbf16>, vector<16x128xbf16>, vector<8x128xf32> -> vector<8x128xf32>
    %5 = vector.broadcast %2 : vector<1x128xf32> to vector<8x128xf32>
    %6 = arith.addf %4, %5 : vector<8x128xf32>
    %cst_5 = arith.constant 0.000000e+00 : f32
    %7 = vector.broadcast %cst_5 : f32 to vector<8x128xf32>
    %8 = arith.maximumf %6, %7 : vector<8x128xf32>
    %c0_6 = arith.constant 0 : index
    %c0_7 = arith.constant 0 : index
    %9 = vector.load %arg4[%c0_6, %c0_7] : memref<128x128xbf16, #tpu.memory_space<vmem>>, vector<128x128xbf16>
    %c0_8 = arith.constant 0 : index
    %c0_9 = arith.constant 0 : index
    %10 = vector.load %arg5[%c0_8, %c0_9] : memref<1x128xf32, #tpu.memory_space<vmem>>, vector<1x128xf32>
    %11 = arith.truncf %8 : vector<8x128xf32> to vector<8x128xbf16>
    %cst_10 = arith.constant dense<0.000000e+00> : vector<8x128xf32>
    %12 = tpu.matmul %11, %9, %cst_10 {dimension_numbers = #tpu.dot_dimension_numbers<[1], [0], [0], [1], [0, 0, 1, 1], [], []>} : vector<8x128xbf16>, vector<128x128xbf16>, vector<8x128xf32> -> vector<8x128xf32>
    %13 = vector.broadcast %10 : vector<1x128xf32> to vector<8x128xf32>
    %14 = arith.addf %12, %13 : vector<8x128xf32>
    %cst_11 = arith.constant 0.000000e+00 : f32
    %15 = vector.broadcast %cst_11 : f32 to vector<8x128xf32>
    %16 = arith.maximumf %14, %15 : vector<8x128xf32>
    %c0_12 = arith.constant 0 : index
    %c0_13 = arith.constant 0 : index
    %17 = vector.load %arg6[%c0_12, %c0_13] : memref<128x128xbf16, #tpu.memory_space<vmem>>, vector<128x128xbf16>
    %c0_14 = arith.constant 0 : index
    %c0_15 = arith.constant 0 : index
    %18 = vector.load %arg7[%c0_14, %c0_15] : memref<1x128xf32, #tpu.memory_space<vmem>>, vector<1x128xf32>
    %19 = arith.truncf %16 : vector<8x128xf32> to vector<8x128xbf16>
    %cst_16 = arith.constant dense<0.000000e+00> : vector<8x128xf32>
    %20 = tpu.matmul %19, %17, %cst_16 {dimension_numbers = #tpu.dot_dimension_numbers<[1], [0], [0], [1], [0, 0, 1, 1], [], []>} : vector<8x128xbf16>, vector<128x128xbf16>, vector<8x128xf32> -> vector<8x128xf32>
    %21 = vector.broadcast %18 : vector<1x128xf32> to vector<8x128xf32>
    %22 = arith.addf %20, %21 : vector<8x128xf32>
    %23 = tpu.iota {dimensions = array<i32: 1>} : vector<8x128xi32>
    %c4_i32 = arith.constant 4 : i32
    %24 = vector.broadcast %c4_i32 : i32 to vector<8x128xi32>
    %25 = arith.cmpi sge, %23, %24 : vector<8x128xi32>
    %cst_17 = arith.constant 0.000000e+00 : f32
    %26 = vector.broadcast %cst_17 : f32 to vector<8x128xf32>
    %27 = arith.select %25, %22, %26 : vector<8x128xi1>, vector<8x128xf32>
    %28 = math.exp %27 : vector<8x128xf32>
    %29 = arith.select %25, %28, %22 : vector<8x128xi1>, vector<8x128xf32>
    %c0_18 = arith.constant 0 : index
    %c0_19 = arith.constant 0 : index
    %30 = vector.load %arg8[%c0_18, %c0_19] : memref<8x128xf32, #tpu.memory_space<vmem>>, vector<8x128xf32>
    tpu.vector_store %arg8[%c0_18, %c0_19], %29 {strides = array<i32>} : memref<8x128xf32, #tpu.memory_space<vmem>>, vector<8x128xf32>,
    return
  }
  func.func @transform_0(%arg0: i32) -> (i32, i32) {
    %c0_i32 = arith.constant 0 : i32
    %c0_i32_0 = arith.constant 0 : i32
    return %arg0, %c0_i32 : i32, i32
  }
  func.func @transform_1(%arg0: i32) -> (i32, i32) {
    %c0_i32 = arith.constant 0 : i32
    %c0_i32_0 = arith.constant 0 : i32
    %c0_i32_1 = arith.constant 0 : i32
    return %c0_i32, %c0_i32_0 : i32, i32
  }
  func.func @transform_2(%arg0: i32) -> (i32, i32) {
    %c0_i32 = arith.constant 0 : i32
    %c0_i32_0 = arith.constant 0 : i32
    %c0_i32_1 = arith.constant 0 : i32
    return %c0_i32, %c0_i32_0 : i32, i32
  }
  func.func @transform_3(%arg0: i32) -> (i32, i32) {
    %c0_i32 = arith.constant 0 : i32
    %c0_i32_0 = arith.constant 0 : i32
    %c0_i32_1 = arith.constant 0 : i32
    return %c0_i32, %c0_i32_0 : i32, i32
  }
  func.func @transform_4(%arg0: i32) -> (i32, i32) {
    %c0_i32 = arith.constant 0 : i32
    %c0_i32_0 = arith.constant 0 : i32
    %c0_i32_1 = arith.constant 0 : i32
    return %c0_i32, %c0_i32_0 : i32, i32
  }
  func.func @transform_5(%arg0: i32) -> (i32, i32) {
    %c0_i32 = arith.constant 0 : i32
    %c0_i32_0 = arith.constant 0 : i32
    %c0_i32_1 = arith.constant 0 : i32
    return %c0_i32, %c0_i32_0 : i32, i32
  }
  func.func @transform_6(%arg0: i32) -> (i32, i32) {
    %c0_i32 = arith.constant 0 : i32
    %c0_i32_0 = arith.constant 0 : i32
    %c0_i32_1 = arith.constant 0 : i32
    return %c0_i32, %c0_i32_0 : i32, i32
  }
  func.func @transform_7(%arg0: i32) -> (i32, i32) {
    %c0_i32 = arith.constant 0 : i32
    %c0_i32_0 = arith.constant 0 : i32
    return %arg0, %c0_i32 : i32, i32
  }
}

</mosaic_0001>

<bundles_post_ra>
// kernel: tpu_custom_call.1
= control target key start
LH: loop header
LB: loop body
LE: loop exit
PB: predicated region body
PF: predicated region fallthrough
CT: control target
= control target key end

     0   :  { %12 = vsyncpa [#allocation3], 0  ;;  %s718_s0 = inlined_call_operand.hbm [shape: f32[8,16], index: 0, kind: input, shape index: {}]   ;;  %s719_s1 = inlined_call_operand.hbm [shape: bf16[16,128], index: 1, kind: input, shape index: {}]   ;;  %s720_s2 = inlined_call_operand.vmem [shape: f32[1,128], index: 2, kind: input, shape index: {}]   ;;  %s721_s3 = inlined_call_operand.hbm [shape: bf16[128,128], index: 3, kind: input, shape index: {}]   ;;  %s722_s4 = inlined_call_operand.vmem [shape: f32[1,128], index: 4, kind: input, shape index: {}]   ;;  %s723_s5 = inlined_call_operand.hbm [shape: bf16[128,128], index: 5, kind: input, shape index: {}]   ;;  %s724_s6 = inlined_call_operand.vmem [shape: f32[1,128], index: 6, kind: input, shape index: {}]   ;;  %s725_s7 = inlined_call_operand.hbm [shape: f32[8,128], index: 7, kind: output, shape index: {}]  }
   0x1   :  { %13 = vsyncpa [#allocation6], 0 }
   0x2   :  { %14 = vsyncpa [#allocation9], 0 }
   0x3   :  { %15 = vsyncpa [#allocation4], 0  ;;  %s616_s24 = smov [#allocation5]  }
   0x4   :  { %s31_s25 = sshll.u32 %s616_s24, 4  ;;  %s32_s25 = int_to_ptr.vmem [resolvable:$true] %s31_s25 }
   0x5   :  { %s516_s26 = scalar_lea.vmem %s32_s25, 128  ;;  %p521_p1 = scmp.lt.s32.totalorder %s32_s25, %s32_s25 }
   0x6   :  { %p517_p0 = scmp.ne.s32.totalorder %s32_s25, %s516_s26  ;;  %p522_p2 = scmp.lt.s32.totalorder %s516_s26, %s516_s26 }
   0x8   :  { %p523_p3 = por %p522_p2, %p521_p1 }
   0xa   :  { %p524_p4 = pnand %p523_p3, %p517_p0 }
   0xc   :  { %527 = shalt.err (!%p524_p4)
}
   0xd   :  { %s617_s27 = smov 64   ;;  %s618_s28 = smov 4  }
   0xe   :  { %37 = dma.hbm_to_vmem [thread:$0]  %s719_s1, 128, %s32_s25, [#allocation6], %s617_s27, %s617_s27, %s618_s28  }
   0xf   :  { %s619_s8 = smov [#allocation2]   ;;  %s620_s10 = smov [#allocation7]  }
  0x10   :  { %s22_s9 = sshll.u32 %s619_s8, 4  ;;  %s45_s11 = sshll.u32 %s620_s10, 4  ;;  %s23_s9 = int_to_ptr.vmem [resolvable:$true] %s22_s9  ;;  %s46_s11 = int_to_ptr.vmem [resolvable:$true] %s45_s11 }
  0x11   :  { %s536_s12 = scalar_lea.vmem %s23_s9, 128  ;;  %p541_p6 = scmp.lt.s32.totalorder %s23_s9, %s23_s9 }
  0x12   :  { %p537_p5 = scmp.ne.s32.totalorder %s23_s9, %s536_s12  ;;  %p542_p7 = scmp.lt.s32.totalorder %s536_s12, %s536_s12 }
  0x14   :  { %p543_p8 = por %p542_p7, %p541_p6 }
  0x16   :  { %p544_p9 = pnand %p543_p8, %p537_p5 }
  0x18   :  { %547 = shalt.err (!%p544_p9)
}
  0x19   :  { %25 = dma.hbm_to_vmem [thread:$0]  %s718_s0, 128, %s23_s9, [#allocation3]  }
  0x1a   :  { %s556_s15 = scalar_lea.vmem %s46_s11, 1024  ;;  %p561_p11 = scmp.lt.s32.totalorder %s46_s11, %s46_s11 }
  0x1b   :  { %p557_p10 = scmp.ne.s32.totalorder %s46_s11, %s556_s15  ;;  %p562_p12 = scmp.lt.s32.totalorder %s556_s15, %s556_s15 }
  0x1d   :  { %p563_p13 = por %p562_p12, %p561_p11 }
  0x1f   :  { %p564_p0 = pnand %p563_p13, %p557_p10 }
  0x21   :  { %567 = shalt.err (!%p564_p0)
}
  0x22   :  { %51 = dma.hbm_to_vmem [thread:$0]  %s721_s3, 1024, %s46_s11, [#allocation6], %s617_s27, %s617_s27, %s618_s28  }
  0x23   :  { %s621_s17 = smov [#allocation8]  }
  0x24   :  { %s59_s18 = sshll.u32 %s621_s17, 4  ;;  %s60_s18 = int_to_ptr.vmem [resolvable:$true] %s59_s18 }
  0x25   :  { %s576_s19 = scalar_lea.vmem %s60_s18, 1024  ;;  %p581_p2 = scmp.lt.s32.totalorder %s60_s18, %s60_s18 }
  0x26   :  { %p577_p1 = scmp.ne.s32.totalorder %s60_s18, %s576_s19  ;;  %p582_p3 = scmp.lt.s32.totalorder %s576_s19, %s576_s19 }
  0x28   :  { %p583_p4 = por %p582_p3, %p581_p2 }
  0x2a   :  { %p584_p5 = pnand %p583_p4, %p577_p1 }
  0x2c   :  { %587 = shalt.err (!%p584_p5)
}
  0x2d   :  { %65 = dma.hbm_to_vmem [thread:$0]  %s723_s5, 1024, %s60_s18, [#allocation9], %s617_s27, %s617_s27, %s618_s28  }
  0x2e   :  { %608 = dma.done.wait [#allocation3], 128  }
  0x2f   :  { %609 = vsyncadd [#allocation3], 4294967168 }
  0x30   :  { %610 = dma.done.wait [#allocation6], 1152  }
  0x31   :  { %611 = vsyncadd [#allocation6], 4294966144 }
  0x32   :  { %612 = dma.done.wait [#allocation9], 1024  }
  0x33   :  { %613 = vsyncadd [#allocation9], 4294966272  ;;  %v622_v0 = vmov 0.0   ;;  %vm623_vm0 = vmmov 0   ;;  %v489_v1 = vld [vmem:[#allocation5] sm:$0xff]   ;;  %v81_v2 = vld [vmem:[#allocation2] sm:$0xff]  ;;  %v368_v36 = vlaneseq }
  0x34   :  { %434 = vmatprep.subr.bf16.mxu0 %v622_v0  ;;  %436 = vmatprep.mubr.msk.bf16.mxu0 %vm623_vm0, %v622_v0  ;;  %v85_v3 = vpack.c.bf16 %v81_v2, %v81_v2  ;;  %vm98_vm1 = vcmask 130048   ;;  %v490_v4 = vld [vmem:[#allocation7 + $0x38] sm:$0xff]   ;;  %v491_v5 = vld [vmem:[#allocation7 + $0x30] sm:$0xff]   ;;  %v492_v6 = vld [vmem:[#allocation7 + $0x28] sm:$0xff]  }
  0x35   :  { %440 = vmatprep.subr.bf16.mxu1 %v622_v0  ;;  %456 = vmatprep.mubr.msk.bf16.mxu1 %vm623_vm0, %v622_v0  ;;  %v493_v7 = vld [vmem:[#allocation7 + $0x20] sm:$0xff]   ;;  %v494_v8 = vld [vmem:[#allocation7 + $0x18] sm:$0xff]   ;;  %v495_v9 = vld [vmem:[#allocation7 + $0x10] sm:$0xff]   ;;  %v369_v37 = vand.u32 127, %v368_v36 }
  0x36   :  { %435 = vmatpush3.bf16.msra.mxu0 %v489_v1  ;;  %441 = vmatpush3.bf16.msra.mxu1 %v490_v4  ;;  %v496_v10 = vld [vmem:[#allocation7 + $0x8] sm:$0xff]   ;;  %v497_v11 = vld [vmem:[#allocation7] sm:$0xff]   ;;  %v498_v12 = vld [vmem:[#allocation8 + $0x38] sm:$0xff]  }
  0x37   :  { %460 = vmatprep.subr.bf16.mxu0 %v622_v0  ;;  %442 = vmatprep.subr.bf16.mxu1 %v622_v0  ;;  %v499_v13 = vld [vmem:[#allocation8 + $0x30] sm:$0xff]   ;;  %v500_v14 = vld [vmem:[#allocation8 + $0x28] sm:$0xff]   ;;  %v501_v15 = vld [vmem:[#allocation8 + $0x20] sm:$0xff]   ;;  %vm370_vm2 = vcmp.ge.s32.totalorder %v369_v37, 4 }
  0x38   :  { %v502_v16 = vld [vmem:[#allocation8 + $0x18] sm:$0xff]   ;;  %v503_v17 = vld [vmem:[#allocation8 + $0x10] sm:$0xff]   ;;  %v504_v26 = vld [vmem:[#allocation8 + $0x8] sm:$0xff]  }
  0x39   :  { %437 = vmatmul.mubr.msk.bf16.vlgmr.msra.gmra.mxu0 %vm98_vm1, %v85_v3  ;;  %v393_v18 = vld [vmem:[%s720_s2] ss:$0 sm:$0xff]  ;;  %v505_v27 = vld [vmem:[#allocation8] sm:$0xff]  }
  0x3a   :  { %476 = vmatprep.mubr.msk.bf16.mxu0 %vm623_vm0, %v622_v0  ;;  %443 = vmatpush3.bf16.msra.mxu1 %v491_v5  ;;  %v396_v28 = vld [vmem:[%s722_s4] ss:$0 sm:$0xff]  ;;  %s624_s4 = smov [#allocation10]  }
  0x3b   :  { %444 = vmatprep.subr.bf16.mxu1 %v622_v0  ;;  %461 = vmatpush3.bf16.msra.mxu0 %v498_v12  ;;  %v405_v38 = vld [vmem:[%s724_s6] ss:$0 sm:$0xff]  ;;  %s382_s24 = sshll.u32 %s624_s4, 4  ;;  %s383_s24 = int_to_ptr.vmem [resolvable:$true] %s382_s24 }
  0x3c   :  { %462 = vmatprep.subr.bf16.mxu0 %v622_v0  ;;  %s588_s25 = scalar_lea.vmem %s383_s24, 128  ;;  %p593_p7 = scmp.lt.s32.totalorder %s383_s24, %s383_s24 }
  0x3d   :  { %p589_p6 = scmp.ne.s32.totalorder %s383_s24, %s588_s25  ;;  %p594_p8 = scmp.lt.s32.totalorder %s588_s25, %s588_s25 }
  0x3e   :  { %445 = vmatpush3.bf16.msra.mxu1 %v492_v6 }
  0x3f   :  { %446 = vmatprep.subr.bf16.mxu1 %v622_v0  ;;  %463 = vmatpush3.bf16.msra.mxu0 %v499_v13  ;;  %p595_p9 = por %p594_p8, %p593_p7 }
  0x40   :  { %464 = vmatprep.subr.bf16.mxu0 %v622_v0 }
  0x41   :  { %p596_p10 = pnand %p595_p9, %p589_p6 }
  0x42   :  { %447 = vmatpush3.bf16.msra.mxu1 %v493_v7 }
  0x43   :  { %448 = vmatprep.subr.bf16.mxu1 %v622_v0  ;;  %465 = vmatpush3.bf16.msra.mxu0 %v500_v14 }
  0x44   :  { %466 = vmatprep.subr.bf16.mxu0 %v622_v0 }
  0x46   :  { %449 = vmatpush3.bf16.msra.mxu1 %v494_v8 }
  0x47   :  { %450 = vmatprep.subr.bf16.mxu1 %v622_v0  ;;  %467 = vmatpush3.bf16.msra.mxu0 %v501_v15 }
  0x48   :  { %468 = vmatprep.subr.bf16.mxu0 %v622_v0 }
  0x4a   :  { %451 = vmatpush3.bf16.msra.mxu1 %v495_v9 }
  0x4b   :  { %452 = vmatprep.subr.bf16.mxu1 %v622_v0  ;;  %469 = vmatpush3.bf16.msra.mxu0 %v502_v16 }
  0x4c   :  { %470 = vmatprep.subr.bf16.mxu0 %v622_v0 }
  0x4e   :  { %453 = vmatpush3.bf16.msra.mxu1 %v496_v10 }
  0x4f   :  { %454 = vmatprep.subr.bf16.mxu1 %v622_v0  ;;  %471 = vmatpush3.bf16.msra.mxu0 %v503_v17 }
  0x50   :  { %472 = vmatprep.subr.bf16.mxu0 %v622_v0 }
  0x52   :  { %455 = vmatpush3.bf16.msra.mxu1 %v497_v11 }
  0x53   :  { %473 = vmatpush3.bf16.msra.mxu0 %v504_v26 }
  0x54   :  { %474 = vmatprep.subr.bf16.mxu0 %v622_v0 }
  0x57   :  { %475 = vmatpush3.bf16.msra.mxu0 %v505_v27 }
  0xf9   :  { %v136_v19 = vpop.f32.mrf.mxu0 }
  0xfa   :  { %v137_v20 = vadd.f32 %v393_v18, %v136_v19 }
  0xfb   :  { %v438_v21 = vpop.f32.mrf.mxu0 }
  0xfc   :  { %v142_v22 = vmax.f32 %v137_v20, 0.0 }
  0xfd   :  { %v139_v23 = vpop.f32.mrf.mxu0 }
  0xfe   :  { %v160_v24 = vpack.c.bf16 %v142_v22, %v142_v22 }
  0xff   :  { %v439_v25 = vpop.f32.mrf.mxu0 }
 0x100   :  { %457 = vmatmul.mubr.bf16.vlgmr.msra.gmra.mxu1 %v160_v24 }
 0x1c0   :  { %v249_v29 = vpop.f32.mrf.mxu1 }
 0x1c1   :  { %v250_v30 = vadd.f32 %v396_v28, %v249_v29 }
 0x1c2   :  { %v458_v31 = vpop.f32.mrf.mxu1 }
 0x1c3   :  { %v255_v32 = vmax.f32 %v250_v30, 0.0 }
 0x1c4   :  { %v252_v33 = vpop.f32.mrf.mxu1 }
 0x1c5   :  { %v273_v34 = vpack.c.bf16 %v255_v32, %v255_v32 }
 0x1c6   :  { %v459_v35 = vpop.f32.mrf.mxu1 }
 0x1c7   :  { %477 = vmatmul.mubr.bf16.vlgmr.msra.gmra.mxu0 %v273_v34 }
 0x287   :  { %v362_v39 = vpop.f32.mrf.mxu0 }
 0x288   :  { %v363_v40 = vadd.f32 %v405_v38, %v362_v39 }
 0x289   :  { %v478_v41 = vpop.f32.mrf.mxu0 }
 0x28a   :  { %v371_v42 = vsel %vm370_vm2, %v363_v40, 0.0 }
 0x28b   :  { %v372_v43 = vmul.f32 1.442695, %v371_v42  ;;  %v365_v44 = vpop.f32.mrf.mxu0 }
 0x28d   :  { %506 = vpow2.f32 %v372_v43  ;;  %v479_v45 = vpop.f32.mrf.mxu0 }
 0x29a   :  { %v507_v46 = vpop.eup %506 }
 0x29b   :  { %v374_v47 = vsel %vm370_vm2, %v507_v46, %v363_v40 }
 0x29c   :  { %375 = vst [vmem:[#allocation10] sm:$0xff] %v374_v47 }
 0x29d   :  { %599 = shalt.err (!%p596_p10)
}
 0x29e   :  { %385 = dma.vmem_to_hbm [thread:$0]  %s383_s24, 128, %s725_s7, [#allocation4]  }
 0x29f   :  { %614 = dma.done.wait [#allocation4], 128  }
 0x2a0   :  { %615 = vsyncadd [#allocation4], 4294967168 }
 0x2a1   :  { %389 = vsyncpa [#allocation3], 1 }
 0x2a2   :  { %390 = vsyncpa [#allocation6], 1 }
 0x2a3   :  { %391 = vsyncpa [#allocation9], 1 }
 0x2a4   :  { %392 = vsyncpa [#allocation4], 1 }

</bundles_post_ra>
